<compile_context>
chip_gen: v5e
topology: v5e:2x2
jax: 0.10.0
libtpu: 0.0.40
codegen_flags: <defaults>
</compile_context>

<pallas_src>
import jax
import jax.numpy as jnp
from jax.experimental import pallas as pl
from jax.experimental.pallas import tpu as pltpu


_SQRT_HALF = 0.7071067811865476


def _erf(z):
    # Abramowitz & Stegun 7.1.26 polynomial (|err| < 1.5e-7): exact-erf GELU
    # semantics of PyTorch's default nn.GELU() using only ops with guaranteed
    # Mosaic lowerings.  The divide goes to the EUP (pl.reciprocal) so the VPU
    # tail of the GELU stays hidden under the MXU.
    a1, a2, a3, a4, a5 = (0.254829592, -0.284496736, 1.421413741,
                          -1.453152027, 1.061405429)
    p = 0.3275911
    az = jnp.abs(z)
    t = pl.reciprocal(1.0 + p * az, approx=True)
    poly = ((((a5 * t + a4) * t + a3) * t + a2) * t + a1) * t
    e = 1.0 - poly * jnp.exp(-az * az)
    return jnp.where(z >= 0.0, e, -e)


def _gelu_exact(x):
    return 0.5 * x * (1.0 + _erf(x * _SQRT_HALF))


# ----------------------------------------------------------------------------
# Kernels
# ----------------------------------------------------------------------------

def _mlp_resident_kernel(x_ref, w1_ref, b1_ref, w2_ref, b2_ref, o_ref):
    # Weights fully VMEM-resident (constant index_map -> fetched once): one
    # grid step per row tile does the whole Hm contraction.  No accumulator,
    # no reduction axis, no init/finalize.
    x = x_ref[...]                                           # f32 residual
    h = jnp.dot(x.astype(jnp.bfloat16), w1_ref[...],
                preferred_element_type=jnp.float32) + b1_ref[...]
    h = _gelu_exact(h)                                       # f32 (VPU/EUP)
    y = jnp.dot(h.astype(jnp.bfloat16), w2_ref[...],
                preferred_element_type=jnp.float32)
    # ResidualAdd.forward: x = fn(x); x += res
    o_ref[...] = y + b2_ref[...] + x


def _mlp_streaming_kernel(x_ref, w1_ref, b1_ref, w2_ref, b2_ref, o_ref,
                          xbf_ref):
    # Hm streamed in tk chunks (grid axis 1, "arbitrary"); partial results of
    # the second matmul accumulate directly into the resident f32 output tile
    # (its block index is constant along k), saving a tm*Hp*4 B scratch.
    k = pl.program_id(1)

    @pl.when(k == 0)
    def _():
        xbf_ref[...] = x_ref[...].astype(jnp.bfloat16)   # cast x once per row
        o_ref[...] = jnp.zeros_like(o_ref)

    h = jnp.dot(xbf_ref[...], w1_ref[...],
                preferred_element_type=jnp.float32) + b1_ref[...]
    h = _gelu_exact(h)
    o_ref[...] += jnp.dot(h.astype(jnp.bfloat16), w2_ref[...],
                          preferred_element_type=jnp.float32)

    @pl.when(k == pl.num_programs(1) - 1)
    def _():
        # ResidualAdd.forward: x = fn(x); x += res
        o_ref[...] = o_ref[...] + b2_ref[...] + x_ref[...]


# ----------------------------------------------------------------------------
# Wrapper
# ----------------------------------------------------------------------------

def _round_up(n, m):
    return ((n + m - 1) // m) * m


def _device_kind():
    try:
        return jax.devices()[0].device_kind.lower()
    except Exception:
        return ""


def _vmem_capacity_bytes():
    try:
        cap = getattr(pltpu.get_tpu_info(), "vmem_capacity_bytes", None)
        if cap:
            return int(cap)
    except Exception:
        pass
    # Fallback from the device-kind string: v7x has 64 MiB / TC, v5e/v6e 128.
    return (64 if "7" in _device_kind() else 128) * 1024 * 1024


def prepare_mlp_params(w1, b1, w2, b2):
    """One-time lane-dense padding (multiples of 128) + bf16 weight cast.

    Do this once at module init so the per-call wrapper adds no HBM-sized
    pad/cast copies of the weight matrices.
    """
    H, Hm = w1.shape
    Hp, Hmp = _round_up(H, 128), _round_up(Hm, 128)
    w1b, w2b = w1.astype(jnp.bfloat16), w2.astype(jnp.bfloat16)
    b1f, b2f = b1.astype(jnp.float32), b2.astype(jnp.float32)
    if (Hp, Hmp) == (H, Hm):
        w1p, w2p = w1b, w2b
        b1p, b2p = b1f.reshape(1, Hm), b2f.reshape(1, H)
    else:
        w1p = jnp.zeros((Hp, Hmp), jnp.bfloat16).at[:H, :Hm].set(w1b)
        w2p = jnp.zeros((Hmp, Hp), jnp.bfloat16).at[:Hm, :H].set(w2b)
        b1p = jnp.zeros((1, Hmp), jnp.float32).at[0, :Hm].set(b1f)
        b2p = jnp.zeros((1, Hp), jnp.float32).at[0, :H].set(b2f)
    return (w1p, b1p, w2p, b2p, H, Hm)


def residual_add_mlp_prepared(x, params, *, tm=None, tk=None,
                              force_streaming=False):
    """x: (B, S, H). Returns fn(x) + x with fn = Linear -> GELU -> Linear."""
    w1p, b1p, w2p, b2p, H, Hm = params
    B, S, Hx = x.shape
    assert Hx == H
    M = B * S
    Hp, Hmp = w1p.shape
    kind = _device_kind()
    vmem_cap = _vmem_capacity_bytes()

    # Fast path: keep both bf16 weight matrices VMEM-resident when they fit in
    # ~1/4 of physical VMEM (<=16 MiB on v7x, <=32 MiB on v5e/v6e).
    weight_bytes = 2 * (Hp * Hmp + Hmp * Hp)
    weights_resident = (not force_streaming) and (
        weight_bytes <= min(vmem_cap // 4, 40 * 1024 * 1024))

    # Row tile: with resident weights each row tile only streams x/o, so
    # tm=256 suffices everywhere.  When streaming weights, v6e's roofline
    # (~700 flops / weight byte) wants tm>=512; v5e is already compute-bound
    # at 256 and v7x's 64 MiB VMEM prefers 256.  Small M: shrink so there are
    # >= 2 row tiles (megacore sharding of the "parallel" axis on v7x).
    if tm is None:
        tm = 512 if (not weights_resident and "v6" in kind) else 256
        if M < 2 * tm:
            tm = max(8, _round_up(max(1, (M + 1) // 2), 8))
    Mp = _round_up(M, tm)

    # Hm (reduction) chunk for the streaming path.
    if tk is None:
        tk = 256 if Hmp % 256 == 0 else 128
    assert Mp % tm == 0 and Hmp % tk == 0 and Hp % 128 == 0

    # Pad x only when needed (typical ViT shapes need none -> zero extra
    # HBM traffic in the wrapper and the output alias hits the real buffer).
    x_flat = x.reshape(M, H).astype(jnp.float32)
    padded = (Mp != M) or (Hp != H)
    x2 = (jnp.zeros((Mp, Hp), jnp.float32).at[:M, :H].set(x_flat)
          if padded else x_flat)

    # Keep ~25% VMEM headroom for Mosaic internal scratch / double buffering
    # (never request all 64 MiB on v7x).
    vmem_limit = min((vmem_cap * 3) // 4, 100 * 1024 * 1024)

    if weights_resident:
        grid = (Mp // tm,)
        in_specs = [
            pl.BlockSpec((tm, Hp), lambda i: (i, 0)),    # x row tile (residual)
            pl.BlockSpec((Hp, Hmp), lambda i: (0, 0)),   # w1: VMEM-resident
            pl.BlockSpec((1, Hmp), lambda i: (0, 0)),    # b1: resident
            pl.BlockSpec((Hmp, Hp), lambda i: (0, 0)),   # w2: VMEM-resident
            pl.BlockSpec((1, Hp), lambda i: (0, 0)),     # b2: resident
        ]
        out_specs = pl.BlockSpec((tm, Hp), lambda i: (i, 0))
        scratch_shapes = []
        kernel = _mlp_resident_kernel
        dims = ("parallel",)
    else:
        grid = (Mp // tm, Hmp // tk)
        in_specs = [
            pl.BlockSpec((tm, Hp), lambda i, k: (i, 0)),   # x row tile
            pl.BlockSpec((Hp, tk), lambda i, k: (0, k)),   # w1 Hm chunk
            pl.BlockSpec((1, tk), lambda i, k: (0, k)),    # b1 Hm chunk
            pl.BlockSpec((tk, Hp), lambda i, k: (k, 0)),   # w2 Hm chunk
            pl.BlockSpec((1, Hp), lambda i, k: (0, 0)),    # b2
        ]
        out_specs = pl.BlockSpec((tm, Hp), lambda i, k: (i, 0))
        scratch_shapes = [pltpu.VMEM((tm, Hp), jnp.bfloat16)]  # cached bf16 x
        kernel = _mlp_streaming_kernel
        dims = ("parallel", "arbitrary")

    out = pl.pallas_call(
        kernel,
        out_shape=jax.ShapeDtypeStruct((Mp, Hp), jnp.float32),
        grid_spec=pltpu.PrefetchScalarGridSpec(
            num_scalar_prefetch=0,
            grid=grid,
            in_specs=in_specs,
            out_specs=out_specs,
            scratch_shapes=scratch_shapes,
        ),
        # out = x + fn(x): reuse x2's HBM buffer for the output.
        input_output_aliases={0: 0},
        compiler_params=pltpu.CompilerParams(
            dimension_semantics=dims,
            vmem_limit_bytes=vmem_limit,
        ),
    )(x2, w1p, b1p, w2p, b2p)

    if padded:
        out = out[:M, :H]
    return out.reshape(B, S, H).astype(x.dtype)


def residual_add_mlp(x, w1, b1, w2, b2, **kw):
    return residual_add_mlp_prepared(x, prepare_mlp_params(w1, b1, w2, b2), **kw)


def _reference(x, w1, b1, w2, b2):
    # Mirrors the kernel numerics: bf16 matmul operands, f32 accumulation,
    # exact (erf) GELU as in PyTorch's default nn.GELU().
    h = jnp.einsum("bsh,hm->bsm", x.astype(jnp.bfloat16),
                   w1.astype(jnp.bfloat16),
                   preferred_element_type=jnp.float32) + b1
    h = jax.nn.gelu(h, approximate=False)
    y = jnp.einsum("bsm,mh->bsh", h.astype(jnp.bfloat16),
                   w2.astype(jnp.bfloat16),
                   preferred_element_type=jnp.float32) + b2
    return y + x


if __name__ == "__main__":
    key = jax.random.PRNGKey(0)
    B, S, H, Hm = 2, 8, 32, 64

    k_x, k_w1, k_b1, k_w2, k_b2 = jax.random.split(key, 5)
    x = jax.random.normal(k_x, (B, S, H), dtype=jnp.float32)
    # deterministic parameter init (synthetic weights, no checkpoint)
    w1 = jax.random.normal(k_w1, (H, Hm), dtype=jnp.float32) * 0.05
    b1 = jax.random.normal(k_b1, (Hm,), dtype=jnp.float32) * 0.01
    w2 = jax.random.normal(k_w2, (Hm, H), dtype=jnp.float32) * 0.05
    b2 = jax.random.normal(k_b2, (H,), dtype=jnp.float32) * 0.01

    ref = _reference(x, w1, b1, w2, b2)
    params = prepare_mlp_params(w1, b1, w2, b2)   # one-time pad/cast

    # Weights-resident fast path (taken automatically at these sizes).
    out_fast = jax.block_until_ready(residual_add_mlp_prepared(x, params))
    assert out_fast.shape == x.shape
    assert jnp.allclose(out_fast, ref, atol=2e-3, rtol=2e-3), \
        "resident path mismatch vs reference"

    # Streaming (k-loop) fallback path, exercised explicitly for coverage.
    out_stream = jax.block_until_ready(
        residual_add_mlp_prepared(x, params, force_streaming=True))
    assert jnp.allclose(out_stream, ref, atol=2e-3, rtol=2e-3), \
        "streaming path mismatch vs reference"

    print("KERNEL_OK")
</pallas_src>

<mosaic_0001>
module attributes {stable_mosaic.version = 11 : i64} {
  func.func @_mlp_resident_kernel(%arg0: i32, %arg1: memref<8x128xf32, #tpu.memory_space<vmem>>, %arg2: memref<128x128xbf16, #tpu.memory_space<vmem>>, %arg3: memref<1x128xf32, #tpu.memory_space<vmem>>, %arg4: memref<128x128xbf16, #tpu.memory_space<vmem>>, %arg5: memref<1x128xf32, #tpu.memory_space<vmem>>, %arg6: memref<8x128xf32, #tpu.memory_space<vmem>>) attributes {dimension_semantics = [#tpu.dimension_semantics<parallel>], iteration_bounds = array<i64: 2>, scalar_prefetch = 0 : i64, scratch_operands = 0 : i64, tpu.core_type = #tpu.core_type<tc>, window_params = [{transform_indices = @transform_0, window_bounds = array<i64: 8, 128>}, {pipeline_mode = #tpu.pipeline_mode<synchronous>, transform_indices = @transform_1, window_bounds = array<i64: 128, 128>}, {pipeline_mode = #tpu.pipeline_mode<synchronous>, transform_indices = @transform_2, window_bounds = array<i64: 1, 128>}, {pipeline_mode = #tpu.pipeline_mode<synchronous>, transform_indices = @transform_3, window_bounds = array<i64: 128, 128>}, {pipeline_mode = #tpu.pipeline_mode<synchronous>, transform_indices = @transform_4, window_bounds = array<i64: 1, 128>}, {transform_indices = @transform_5, window_bounds = array<i64: 8, 128>}]} {
    %c0 = arith.constant 0 : index
    %c0_0 = arith.constant 0 : index
    %0 = vector.load %arg1[%c0, %c0_0] : memref<8x128xf32, #tpu.memory_space<vmem>>, vector<8x128xf32>
    %1 = arith.truncf %0 : vector<8x128xf32> to vector<8x128xbf16>
    %c0_1 = arith.constant 0 : index
    %c0_2 = arith.constant 0 : index
    %2 = vector.load %arg2[%c0_1, %c0_2] : memref<128x128xbf16, #tpu.memory_space<vmem>>, vector<128x128xbf16>
    %cst = arith.constant dense<0.000000e+00> : vector<8x128xf32>
    %3 = tpu.matmul %1, %2, %cst {dimension_numbers = #tpu.dot_dimension_numbers<[1], [0], [0], [1], [0, 0, 1, 1], [], []>} : vector<8x128xbf16>, vector<128x128xbf16>, vector<8x128xf32> -> vector<8x128xf32>
    %c0_3 = arith.constant 0 : index
    %c0_4 = arith.constant 0 : index
    %4 = vector.load %arg3[%c0_3, %c0_4] : memref<1x128xf32, #tpu.memory_space<vmem>>, vector<1x128xf32>
    %5 = vector.broadcast %4 : vector<1x128xf32> to vector<8x128xf32>
    %6 = arith.addf %3, %5 : vector<8x128xf32>
    %cst_5 = arith.constant 5.000000e-01 : f32
    %7 = vector.broadcast %cst_5 : f32 to vector<8x128xf32>
    %8 = arith.mulf %7, %6 : vector<8x128xf32>
    %cst_6 = arith.constant 0.707106769 : f32
    %9 = vector.broadcast %cst_6 : f32 to vector<8x128xf32>
    %10 = arith.mulf %6, %9 : vector<8x128xf32>
    %11 = math.absf %10 : vector<8x128xf32>
    %cst_7 = arith.constant 0.327591091 : f32
    %12 = vector.broadcast %cst_7 : f32 to vector<8x128xf32>
    %13 = arith.mulf %12, %11 : vector<8x128xf32>
    %cst_8 = arith.constant 1.000000e+00 : f32
    %14 = vector.broadcast %cst_8 : f32 to vector<8x128xf32>
    %15 = arith.addf %14, %13 : vector<8x128xf32>
    %16 = tpu.reciprocal %15 {approx = true} : vector<8x128xf32> -> vector<8x128xf32>
    %cst_9 = arith.constant 1.06140542 : f32
    %17 = vector.broadcast %cst_9 : f32 to vector<8x128xf32>
    %18 = arith.mulf %17, %16 : vector<8x128xf32>
    %cst_10 = arith.constant -1.45315206 : f32
    %19 = vector.broadcast %cst_10 : f32 to vector<8x128xf32>
    %20 = arith.addf %18, %19 : vector<8x128xf32>
    %21 = arith.mulf %20, %16 : vector<8x128xf32>
    %cst_11 = arith.constant 1.42141378 : f32
    %22 = vector.broadcast %cst_11 : f32 to vector<8x128xf32>
    %23 = arith.addf %21, %22 : vector<8x128xf32>
    %24 = arith.mulf %23, %16 : vector<8x128xf32>
    %cst_12 = arith.constant -0.284496725 : f32
    %25 = vector.broadcast %cst_12 : f32 to vector<8x128xf32>
    %26 = arith.addf %24, %25 : vector<8x128xf32>
    %27 = arith.mulf %26, %16 : vector<8x128xf32>
    %cst_13 = arith.constant 0.254829586 : f32
    %28 = vector.broadcast %cst_13 : f32 to vector<8x128xf32>
    %29 = arith.addf %27, %28 : vector<8x128xf32>
    %30 = arith.mulf %29, %16 : vector<8x128xf32>
    %cst_14 = arith.constant 0.000000e+00 : f32
    %31 = vector.broadcast %cst_14 : f32 to vector<8x128xf32>
    %32 = arith.subf %31, %11 : vector<8x128xf32>
    %33 = arith.mulf %32, %11 : vector<8x128xf32>
    %34 = math.exp %33 : vector<8x128xf32>
    %35 = arith.mulf %30, %34 : vector<8x128xf32>
    %cst_15 = arith.constant 1.000000e+00 : f32
    %36 = vector.broadcast %cst_15 : f32 to vector<8x128xf32>
    %37 = arith.subf %36, %35 : vector<8x128xf32>
    %cst_16 = arith.constant 0.000000e+00 : f32
    %38 = vector.broadcast %cst_16 : f32 to vector<8x128xf32>
    %39 = arith.cmpf oge, %10, %38 : vector<8x128xf32>
    %cst_17 = arith.constant 0.000000e+00 : f32
    %40 = vector.broadcast %cst_17 : f32 to vector<8x128xf32>
    %41 = arith.subf %40, %37 : vector<8x128xf32>
    %42 = arith.select %39, %37, %41 : vector<8x128xi1>, vector<8x128xf32>
    %cst_18 = arith.constant 1.000000e+00 : f32
    %43 = vector.broadcast %cst_18 : f32 to vector<8x128xf32>
    %44 = arith.addf %43, %42 : vector<8x128xf32>
    %45 = arith.mulf %8, %44 : vector<8x128xf32>
    %46 = arith.truncf %45 : vector<8x128xf32> to vector<8x128xbf16>
    %c0_19 = arith.constant 0 : index
    %c0_20 = arith.constant 0 : index
    %47 = vector.load %arg4[%c0_19, %c0_20] : memref<128x128xbf16, #tpu.memory_space<vmem>>, vector<128x128xbf16>
    %cst_21 = arith.constant dense<0.000000e+00> : vector<8x128xf32>
    %48 = tpu.matmul %46, %47, %cst_21 {dimension_numbers = #tpu.dot_dimension_numbers<[1], [0], [0], [1], [0, 0, 1, 1], [], []>} : vector<8x128xbf16>, vector<128x128xbf16>, vector<8x128xf32> -> vector<8x128xf32>
    %c0_22 = arith.constant 0 : index
    %c0_23 = arith.constant 0 : index
    %49 = vector.load %arg5[%c0_22, %c0_23] : memref<1x128xf32, #tpu.memory_space<vmem>>, vector<1x128xf32>
    %50 = vector.broadcast %49 : vector<1x128xf32> to vector<8x128xf32>
    %51 = arith.addf %48, %50 : vector<8x128xf32>
    %52 = arith.addf %51, %0 : vector<8x128xf32>
    %c0_24 = arith.constant 0 : index
    %c0_25 = arith.constant 0 : index
    %53 = vector.load %arg6[%c0_24, %c0_25] : memref<8x128xf32, #tpu.memory_space<vmem>>, vector<8x128xf32>
    tpu.vector_store %arg6[%c0_24, %c0_25], %52 {strides = array<i32>} : memref<8x128xf32, #tpu.memory_space<vmem>>, vector<8x128xf32>,
    return
  }
  func.func @transform_0(%arg0: i32) -> (i32, i32) {
    %c0_i32 = arith.constant 0 : i32
    %c0_i32_0 = arith.constant 0 : i32
    return %arg0, %c0_i32 : i32, i32
  }
  func.func @transform_1(%arg0: i32) -> (i32, i32) {
    %c0_i32 = arith.constant 0 : i32
    %c0_i32_0 = arith.constant 0 : i32
    %c0_i32_1 = arith.constant 0 : i32
    return %c0_i32, %c0_i32_0 : i32, i32
  }
  func.func @transform_2(%arg0: i32) -> (i32, i32) {
    %c0_i32 = arith.constant 0 : i32
    %c0_i32_0 = arith.constant 0 : i32
    %c0_i32_1 = arith.constant 0 : i32
    return %c0_i32, %c0_i32_0 : i32, i32
  }
  func.func @transform_3(%arg0: i32) -> (i32, i32) {
    %c0_i32 = arith.constant 0 : i32
    %c0_i32_0 = arith.constant 0 : i32
    %c0_i32_1 = arith.constant 0 : i32
    return %c0_i32, %c0_i32_0 : i32, i32
  }
  func.func @transform_4(%arg0: i32) -> (i32, i32) {
    %c0_i32 = arith.constant 0 : i32
    %c0_i32_0 = arith.constant 0 : i32
    %c0_i32_1 = arith.constant 0 : i32
    return %c0_i32, %c0_i32_0 : i32, i32
  }
  func.func @transform_5(%arg0: i32) -> (i32, i32) {
    %c0_i32 = arith.constant 0 : i32
    %c0_i32_0 = arith.constant 0 : i32
    return %arg0, %c0_i32 : i32, i32
  }
}

</mosaic_0001>

<bundles_post_ra>
// kernel: tpu_custom_call.1
= control target key start
LH: loop header
LB: loop body
LE: loop exit
PB: predicated region body
PF: predicated region fallthrough
CT: control target
= control target key end

     0   :  { %10 = vsyncpa [#allocation3], 0  ;;  %s1095_s0 = inlined_call_operand.hbm [shape: f32[16,128], index: 0, kind: input, shape index: {}, may-alias: {0,5}]   ;;  %s1096_s1 = inlined_call_operand.hbm [shape: bf16[128,128], index: 1, kind: input, shape index: {}]   ;;  %s1097_s2 = inlined_call_operand.vmem [shape: f32[1,128], index: 2, kind: input, shape index: {}]   ;;  %s1098_s3 = inlined_call_operand.hbm [shape: bf16[128,128], index: 3, kind: input, shape index: {}]   ;;  %s1099_s4 = inlined_call_operand.vmem [shape: f32[1,128], index: 4, kind: input, shape index: {}]   ;;  %s1100_s5 = inlined_call_operand.hbm [shape: f32[16,128], index: 5, kind: output, shape index: {}, may-alias: {0,5}]  }
   0x1   :  { %12 = vsyncpa [#allocation3 + $0x1], 0 }
   0x2   :  { %13 = vsyncpa [#allocation6], 0 }
   0x3   :  { %14 = vsyncpa [#allocation4], 0 }
   0x4   :  { %16 = vsyncpa [#allocation4 + $0x1], 0  ;;  %s940_s18 = smov 0   ;;  %s942_s19 = smov 0  }
   0x5   :  { %s944_s20 = smov 0   ;;  %s946_s21 = smov 0  }
   0x6 LB: > { %s174_s24 = sshll.u32 %s1096_s1, 4  ;;  %s964_s25 = sadd.s32 4294967295, %s904_s21   ;;  %s904_s21 = sphi %s946_s21, %s1111_s21   ;;  %s900_s20 = sphi %s944_s20, %s1110_s20   ;;  %s896_s19 = sphi %s942_s19, %s1109_s19   ;;  %s892_s18 = sphi %s940_s18, %s1108_s18   ;;  %s175_s24 = int_to_ptr.hbm [resolvable:$true] %s174_s24 }
   0x7   : > { %p574_p0 = scmp.ge.s32.totalorder %s904_s21, 1  ;;  %p43_p1 = scmp.eq.s32.totalorder %s964_s25, 0 }
   0x8   : > { %p163_p2 = scmp.lt.s32.totalorder %s904_s21, 3  ;;  %s906_s27 = smov [#allocation5]  }
   0x9   : > { %s176_s28 = sshll.u32 %s906_s27, 4  ;;  %s191_s6 = sshll.u32 %s1098_s3, 4  ;;  %s177_s28 = int_to_ptr.vmem [resolvable:$true] %s176_s28  ;;  %s192_s6 = int_to_ptr.hbm [resolvable:$true] %s191_s6 }
   0xa   : > { %p969_p3 = pnand %p574_p0, %p163_p2  ;;  %s907_s7 = smov [#allocation7]  }
   0xb   : > { %s193_s8 = sshll.u32 %s907_s7, 4  ;;  %s908_s9 = smov 64   ;;  %s194_s8 = int_to_ptr.vmem [resolvable:$true] %s193_s8 }
   0xc   : > { %p681_p4 = pneg %p969_p3  ;;  %s909_s10 = smov 4  }
   0xd   : > { %s573_s11 = sadd.s32 4294967294, %s904_s21   ;;  %s983_s12 = sadd.s32 1, %s904_s21  }
   0xe   : > { %p682_p6 = pnand %p681_p4, %p43_p1  ;;  %s26_s13 = ssub.s32 %s904_s21, %s983_s12 }
   0xf   : > { %s29_s14 = sadd.s32 1, %s900_s20  ;;  %p27_p7 = scmp.eq.s32.totalorder %s26_s13, 0 }
  0x10   : > { %684 = dma.hbm_to_vmem [thread:$0]  (!%p682_p6), %s175_s24, 1024, %s177_s28, [#allocation6], %s908_s9, %s908_s9, %s909_s10  }
  0x11   : > { %687 = dma.hbm_to_vmem [thread:$0]  (!%p682_p6), %s192_s6, 1024, %s194_s8, [#allocation6], %s908_s9, %s908_s9, %s909_s10  }
  0x12   : > { %p36_p8 = scmp.ne.s32.totalorder %s900_s20, %s896_s19  ;;  %p37_p9 = scmp.eq.s32.totalorder %s904_s21, 0 }
  0x13   : > { %p42_p10 = scmp.ne.s32.totalorder %s896_s19, %s892_s18  ;;  %p150_p13 = scmp.eq.s32.totalorder %s964_s25, 1 }
  0x14   : > { %s994_s15 = scalar_select %p27_p7, %s900_s20, %s29_s14  }
  0x15   : > { %p996_p11 = por %p37_p9, %p36_p8  ;;  %p1002_p12 = por %p43_p1, %p42_p10 }
  0x16   : > { %p156_p0 = scmp.eq.s32.totalorder %s573_s11, 1  ;;  %p698_p2 = scmp.lt.s32.totalorder %s904_s21, 2 }
  0x17   : > { %s210_s22 = sand.u32 1, %s900_s20   ;;  %p1009_p4 = por %p150_p13, %p36_p8 }
  0x18   : > { %p1013_p6 = por %p156_p0, %p42_p10  ;;  %s578_s27 = sshll.u32 %s210_s22, 3 }
  0x19   : > { %s579_s28 = sshll.u32 %s904_s21, 3  ;;  %s214_s7 = scalar_lea.vmem [#allocation2], %s578_s27 }
  0x1a   : > { %s218_s6 = scalar_lea.hbm %s1095_s0, %s579_s28  ;;  %s222_s8 = sshll.u32 %s214_s7, 4  ;;  %s223_s8 = int_to_ptr.vmem [resolvable:$true] %s222_s8 }
  0x1b   : > { %s220_s9 = sshll.u32 %s218_s6, 4  ;;  %p1023_p7 = pnand %p698_p2, %p996_p11  ;;  %s221_s9 = int_to_ptr.hbm [resolvable:$true] %s220_s9 }
  0x1c   : > { %s211_s11 = scalar_lea.sflag [#allocation3], %s210_s22  ;;  %s804_s13 = sshra.s32 %s221_s9, 4  ;;  %s805_s13 = int_to_ptr.hbm [resolvable:$true] %s804_s13 }
  0x1d   : > { %s806_s14 = scalar_lea.hbm %s805_s13, 8  ;;  %p808_p9 = pneg %p1023_p7 }
  0x1e   : > { %p807_p8 = scmp.ne.s32.totalorder %s805_s13, %s806_s14  ;;  %s811_s29 = scalar_lea.hbm %s1095_s0, 16 }
  0x1f   : > { %p812_p11 = scmp.lt.s32.totalorder %s805_s13, %s1095_s0  ;;  %p813_p0 = scmp.lt.s32.totalorder %s811_s29, %s806_s14 }
  0x20   : > { %p809_p10 = pnand %p808_p9, %p807_p8 }
  0x21   : > { %p814_p2 = por %p813_p0, %p812_p11 }
  0x22   : > { %p810_p13 = pneg %p809_p10 }
  0x24   : > { %p815_p5 = pnand %p814_p2, %p810_p13 }
  0x26   : > { %818 = shalt.err (!%p815_p5)
}
  0x27   : > { %691 = dma.hbm_to_vmem [thread:$0]  (!%p1023_p7), %s221_s9, 128, %s223_s8, %s211_s11  }
  0x28   : > { %231 = sbr.rel (%p969_p3) target bundleno = 388 (0x184), region = 40  ;;  %s1040_s22 = sand.u32 (!%p969_p3), 1, %s896_s19  }
  0x29   : > { %s581_s6 = sshll.u32 (!%p969_p3), %s1040_s22, 3  ;;  %s234_s7 = scalar_lea.sflag (!%p969_p3), [#allocation3], %s1040_s22 }
  0x2a   : > { %s237_s13 = scalar_lea.vmem (!%p969_p3), [#allocation2], %s581_s6 }
  0x2d   : > { %879 = dma.done.wait (%p1002_p12), %s234_s7, 128  }
  0x2e   : > { %881 = vsyncadd (%p1002_p12), %s234_s7, 4294967168 }
  0x2f   : > { %883 = dma.done.wait (%p43_p1), [#allocation6], 2048  }
  0x30   : > { %885 = vsyncadd (%p43_p1), [#allocation6], 4294965248  ;;  %v660_v0 = vld [vmem:[#allocation5 + $0x38] sm:$0xff]  ;;  %v659_v1 = vld [vmem:[#allocation5 + $0x30] sm:$0xff]  ;;  %s650_s8 = sshll.u32 %s964_s25, 3  ;;  %s274_s28 = scalar_lea.vmem [#allocation8], %s581_s6 }
  0x31   : > { %345 = vmatpush.bf16.msra.mxu0 %v660_v0  ;;  %v658_v2 = vld [vmem:[#allocation5 + $0x28] sm:$0xff]  ;;  %v657_v3 = vld [vmem:[#allocation5 + $0x20] sm:$0xff]  ;;  %v656_v4 = vld [vmem:[#allocation5 + $0x18] sm:$0xff]  ;;  %s479_s27 = scalar_lea.hbm %s1100_s5, %s650_s8  ;;  %s481_s29 = sshll.u32 %s274_s28, 4  ;;  %s482_s29 = int_to_ptr.vmem [resolvable:$true] %s481_s29 }
  0x32   : > { %v655_v5 = vld [vmem:[#allocation5 + $0x10] sm:$0xff]  ;;  %v654_v6 = vld [vmem:[#allocation5 + $0x8] sm:$0xff]  ;;  %v653_v7 = vld [vmem:[#allocation5] sm:$0xff]  ;;  %s483_s30 = sshll.u32 %s479_s27, 4  ;;  %s469_s25 = scalar_lea.sflag [#allocation4], %s1040_s22  ;;  %s484_s30 = int_to_ptr.hbm [resolvable:$true] %s483_s30 }
  0x33   : > { %v275_v8 = vld [vmem:[%s237_s13] sm:$0xff]  ;;  %v666_v12 = vld [vmem:[#allocation7 + $0x28] sm:$0xff]  ;;  %v665_v13 = vld [vmem:[#allocation7 + $0x20] sm:$0xff]  ;;  %s848_s16 = sshra.s32 %s484_s30, 4  ;;  %s854_s17 = scalar_lea.hbm %s1100_s5, 16  ;;  %s849_s16 = int_to_ptr.hbm [resolvable:$true] %s848_s16 }
  0x34   : > { %v276_v9 = vpack.c.bf16 %v275_v8, %v275_v8  ;;  %v668_v10 = vld [vmem:[#allocation7 + $0x38] sm:$0xff]  ;;  %v667_v11 = vld [vmem:[#allocation7 + $0x30] sm:$0xff]  ;;  %v662_v20 = vld [vmem:[#allocation7 + $0x8] sm:$0xff]  ;;  %s850_s7 = scalar_lea.hbm %s849_s16, 8  ;;  %p855_p12 = scmp.lt.s32.totalorder %s849_s16, %s1100_s5 }
  0x35   : > { %346 = vmatpush.bf16.msra.mxu0 %v659_v1  ;;  %453 = vmatpush.bf16.msra.mxu1 %v668_v10  ;;  %v664_v14 = vld [vmem:[#allocation7 + $0x18] sm:$0xff]  ;;  %v738_v15 = vld [vmem:[%s1097_s2] ss:$0 sm:$0xff]  ;;  %v661_v23 = vld [vmem:[#allocation7] sm:$0xff]  ;;  %p851_p1 = scmp.ne.s32.totalorder %s849_s16, %s850_s7  ;;  %p856_p7 = scmp.lt.s32.totalorder %s854_s17, %s850_s7 }
  0x36   : > { %v663_v16 = vld [vmem:[#allocation7 + $0x10] sm:$0xff] }
  0x37   : > { %v739_v48 = vld [vmem:[%s1099_s4] ss:$0 sm:$0xff]  ;;  %p852_p3 = pnand %p851_p1, %p1009_p4  ;;  %p857_p8 = por %p856_p7, %p855_p12 }
  0x39   : > { %347 = vmatpush.bf16.msra.mxu0 %v658_v2  ;;  %454 = vmatpush.bf16.msra.mxu1 %v667_v11  ;;  %p853_p5 = pneg %p852_p3 }
  0x3b   : > { %p858_p9 = pnand %p857_p8, %p853_p5 }
  0x3d   : > { %348 = vmatpush.bf16.msra.mxu0 %v657_v3  ;;  %455 = vmatpush.bf16.msra.mxu1 %v666_v12 }
  0x41   : > { %349 = vmatpush.bf16.msra.mxu0 %v656_v4  ;;  %456 = vmatpush.bf16.msra.mxu1 %v665_v13 }
  0x45   : > { %350 = vmatpush.bf16.msra.mxu0 %v655_v5  ;;  %457 = vmatpush.bf16.msra.mxu1 %v664_v14 }
  0x49   : > { %351 = vmatpush.bf16.msra.mxu0 %v654_v6  ;;  %458 = vmatpush.bf16.msra.mxu1 %v663_v16 }
  0x4d   : > { %352 = vmatpush.bf16.msra.mxu0 %v653_v7  ;;  %459 = vmatpush.bf16.msra.mxu1 %v662_v20 }
  0x50   : > { %353 = vmatmul.bf16.vlgmr.msra.gmra.mxu0 %v276_v9 }
  0x51   : > { %460 = vmatpush.bf16.msra.mxu1 %v661_v23 }
  0xcd   : > { %v354_v17 = vpop.f32.mrf.mxu0 }
  0xce   : > { %v355_v18 = vadd.f32 %v738_v15, %v354_v17 }
  0xd0   : > { %v359_v19 = vmul.f32 0.70710677, %v355_v18  ;;  %v358_v44 = vmul.f32 0.5, %v355_v18 }
  0xd2   : > { %v360_v21 = vand.u32 2147483647, %v359_v19  ;;  %vm379_vm0 = vcmp.ge.f32.partialorder %v359_v19, 0.0 }
  0xd4   : > { %v361_v22 = vmul.f32 0.3275911, %v360_v21  ;;  %v373_v27 = vsub.f32 0.0, %v360_v21 }
  0xd5   : > { %v356_v24 = vpop.f32.mrf.mxu0 }
  0xd6   : > { %v362_v25 = vadd.f32 1.0, %v361_v22  ;;  %v374_v30 = vmul.f32 %v373_v27, %v360_v21 }
  0xd8   : > { %740 = vrcp.f32 %v362_v25  ;;  %v375_v33 = vmul.f32 1.442695, %v374_v30 }
  0xda   : > { %742 = vpow2.f32 %v375_v33 }
  0xde   : > { %v741_v26 = vpop.eup %740 }
  0xdf   : > { %v364_v28 = vmul.f32 1.0614054, %v741_v26 }
  0xe0   : > { %v743_v39 = vpop.eup %742 }
  0xe1   : > { %v365_v29 = vadd.f32 -1.4531521, %v364_v28 }
  0xe3   : > { %v366_v31 = vmul.f32 %v741_v26, %v365_v29 }
  0xe5   : > { %v367_v32 = vadd.f32 1.4214138, %v366_v31 }
  0xe7   : > { %v368_v34 = vmul.f32 %v741_v26, %v367_v32 }
  0xe9   : > { %v369_v35 = vadd.f32 -0.28449672, %v368_v34 }
  0xeb   : > { %v370_v36 = vmul.f32 %v741_v26, %v369_v35 }
  0xed   : > { %v371_v37 = vadd.f32 0.2548296, %v370_v36 }
  0xef   : > { %v372_v38 = vmul.f32 %v741_v26, %v371_v37 }
  0xf1   : > { %v377_v40 = vmul.f32 %v743_v39, %v372_v38 }
  0xf3   : > { %v378_v41 = vsub.f32 1.0, %v377_v40 }
  0xf5   : > { %v380_v42 = vsub.f32 0.0, %v378_v41 }
  0xf7   : > { %v381_v43 = vsel %vm379_vm0, %v378_v41, %v380_v42 }
  0xf8   : > { %v382_v45 = vadd.f32 1.0, %v381_v43 }
  0xfa   : > { %v383_v46 = vmul.f32 %v382_v45, %v358_v44 }
  0xfc   : > { %v384_v47 = vpack.c.bf16 %v383_v46, %v383_v46 }
  0xfe   : > { %461 = vmatmul.bf16.vlgmr.msra.gmra.mxu1 %v384_v47 }
 0x17b   : > { %v462_v49 = vpop.f32.mrf.mxu1 }
 0x17c   : > { %v463_v50 = vadd.f32 %v739_v48, %v462_v49 }
 0x17e   : > { %v466_v51 = vadd.f32 %v463_v50, %v275_v8 }
 0x180   : > { %467 = vst [vmem:[%s274_s28] sm:$0xff] %v466_v51 }
 0x181   : > { %861 = shalt.err (!%p858_p9)
}
 0x182   : > { %679 = dma.vmem_to_hbm [thread:$0]  (%p1009_p4), %s482_s29, 128, %s484_s30, %s469_s25  }
 0x183   : > { %v464_v52 = vpop.f32.mrf.mxu1 }
 0x184 PF: > { %s495_s22 = sand.u32 1, %s892_s18   ;;  %p1107_p10 = scmp.ge.s32.totalorder %s904_s21, 2 }
 0x185   : > { %s496_s9 = scalar_lea.sflag [#allocation4], %s495_s22 }
 0x186   : > { %p693_p13 = pnand %p1107_p10, %p1013_p6 }
 0x188   : > { %p694_p11 = pneg %p693_p13 }
 0x18a   : > { %887 = dma.done.wait (%p694_p11), %s496_s9, 128  }
 0x18b   : > { %889 = vsyncadd (%p694_p11), %s496_s9, 4294967168  ;;  %p19_p0 = scmp.ge.s32.totalorder %s983_s12, 4   ;;  %s1108_s18 = smov %s896_s19 }
 0x18c   : > { %s1109_s19 = smov %s900_s20  ;;  %s1110_s20 = smov %s994_s15 }
 0x18d   : > { %s1111_s21 = smov %s983_s12  ;;  %21 = sbr.rel (!%p19_p0) target bundleno = 6 (0x6), region = 93 }
 0x192   :  { %502 = vsyncpa [#allocation3], 1 }
 0x193   :  { %504 = vsyncpa [#allocation3 + $0x1], 1 }
 0x194   :  { %505 = vsyncpa [#allocation6], 1 }
 0x195   :  { %506 = vsyncpa [#allocation4], 1 }
 0x196   :  { %508 = vsyncpa [#allocation4 + $0x1], 1 }

</bundles_post_ra>
